<compile_context>
chip_gen: v5e
topology: v5e:2x2
jax: 0.10.0
libtpu: 0.0.40
codegen_flags: <defaults>
</compile_context>

<pallas_src>
import math

import jax
import jax.numpy as jnp
from jax import lax
from jax.experimental import pallas as pl
from jax.experimental.pallas import tpu as pltpu

LANE = 128


def _round_up(x, m):
    return (x + m - 1) // m * m


def _attention_kernel(q_ref, k_ref, v_ref,
                      wq_ref, bq_ref, wk_ref, bk_ref, wv_ref, bv_ref,
                      out_ref):
    # Projections: bf16 operands, f32 MXU accumulation, f32 bias add.
    # 1/sqrt(attention_size) is already folded into wq/bq (one-time prep).
    query = (jnp.dot(q_ref[...], wq_ref[...],
                     preferred_element_type=jnp.float32)
             + bq_ref[...]).astype(jnp.bfloat16)
    key = (jnp.dot(k_ref[...], wk_ref[...],
                   preferred_element_type=jnp.float32)
           + bk_ref[...]).astype(jnp.bfloat16)
    value = (jnp.dot(v_ref[...], wv_ref[...],
                     preferred_element_type=jnp.float32)
             + bv_ref[...]).astype(jnp.bfloat16)

    # Scores (Nq, Nk): Q @ K^T via a (1,1)-contraction; the MXU consumes the
    # transposed RHS natively (no in-kernel transpose / relayout of `key`).
    g = lax.dot_general(query, key, (((1,), (1,)), ((), ())),
                        preferred_element_type=jnp.float32)

    # Row-wise softmax kept fully in f32; approx reciprocal -> EUP slot.
    g_max = jnp.max(g, axis=-1, keepdims=True)
    e = jnp.exp(g - g_max)
    denom = jnp.sum(e, axis=-1, keepdims=True)
    score = (e * pl.reciprocal(denom, approx=True)).astype(jnp.bfloat16)

    # output = score @ value; lane-dense (128-padded) store.
    out_ref[...] = jnp.dot(score, value,
                           preferred_element_type=jnp.float32
                           ).astype(out_ref.dtype)


def prepare_params(params, attention_size):
    """One-time parameter prep -- call once at init, NOT per forward.

    * PyTorch (out, in) weights -> (in, out): no in-kernel transpose.
    * 1/sqrt(attention_size) folded into the Q weight + bias (free at prep
      time, removes the per-element scale from the kernel).
    * Output-feature dims zero-padded to a multiple of 128 lanes so every
      projected intermediate and the kernel output are lane-dense.
    * Matmul operands cast to bf16; biases stay f32 (added to f32 accums).
    """
    wq, bq, wk, bk, wv, bv = params
    scale = 1.0 / math.sqrt(attention_size)

    def pad_cols(w_io, b_o):
        out = w_io.shape[1]
        out_p = _round_up(out, LANE)
        w_p = jnp.pad(w_io, ((0, 0), (0, out_p - out)))
        b_p = jnp.pad(b_o.reshape(1, -1), ((0, 0), (0, out_p - out)))
        return w_p.astype(jnp.bfloat16), b_p.astype(jnp.float32)

    wq_p, bq_p = pad_cols(wq.T * scale, bq * scale)
    wk_p, bk_p = pad_cols(wk.T, bk)
    wv_p, bv_p = pad_cols(wv.T, bv)
    return {"wq": wq_p, "bq": bq_p, "wk": wk_p, "bk": bk_p,
            "wv": wv_p, "bv": bv_p, "value_size": int(wv.shape[0])}


# TODO(synk): at realistic Nq/Nk this should become a tiled online-softmax
# (flash) kernel: 'parallel' q-tile axis + 'arbitrary' kv axis, projection
# weights kept resident across the grid, and tiles sized for v7x's 64 MiB
# VMEM (roughly half of what works on v5e/v6e).
def single_head_attention(q, k, v, prepared):
    """Single (Nq, d) problem: grid-less, whole arrays resident in VMEM."""
    Nq = q.shape[0]
    v_pad = prepared["wv"].shape[1]
    value_size = prepared["value_size"]

    vmem = pl.BlockSpec(memory_space=pltpu.MemorySpace.VMEM)
    # NOTE: once shapes grow, add
    #   compiler_params=pltpu.CompilerParams(vmem_limit_bytes=...)
    # (scoped default: 16 MiB v5e / 32 MiB v6e+v7x) or switch to the tiled
    # flash path above.
    out = pl.pallas_call(
        _attention_kernel,
        out_shape=jax.ShapeDtypeStruct((Nq, v_pad), jnp.float32),
        in_specs=[vmem] * 9,
        out_specs=vmem,
    )(q.astype(jnp.bfloat16), k.astype(jnp.bfloat16), v.astype(jnp.bfloat16),
      prepared["wq"], prepared["bq"], prepared["wk"], prepared["bk"],
      prepared["wv"], prepared["bv"])
    return out[:, :value_size] if v_pad != value_size else out


def single_head_attention_batched(q, k, v, prepared):
    """Batched (B, Nq, d) attention: one pallas_call with a leading 'parallel'
    grid axis (amortizes dispatch; keeps both v7x TensorCores busy).
    Weights/biases use constant index_maps so they stay resident in VMEM."""
    B, Nq, dq = q.shape
    _, Nk, dk = k.shape
    v_pad = prepared["wv"].shape[1]
    value_size = prepared["value_size"]

    def per_batch(n, d):
        return pl.BlockSpec((None, n, d), lambda b: (b, 0, 0))

    def resident(arr):
        return pl.BlockSpec(arr.shape, lambda b: (0, 0))

    out = pl.pallas_call(
        _attention_kernel,
        out_shape=jax.ShapeDtypeStruct((B, Nq, v_pad), jnp.float32),
        grid=(B,),
        in_specs=[per_batch(Nq, dq), per_batch(Nk, dk), per_batch(Nk, dq),
                  resident(prepared["wq"]), resident(prepared["bq"]),
                  resident(prepared["wk"]), resident(prepared["bk"]),
                  resident(prepared["wv"]), resident(prepared["bv"])],
        out_specs=pl.BlockSpec((None, Nq, v_pad), lambda b: (b, 0, 0)),
        compiler_params=pltpu.CompilerParams(
            dimension_semantics=("parallel",)),
    )(q.astype(jnp.bfloat16), k.astype(jnp.bfloat16), v.astype(jnp.bfloat16),
      prepared["wq"], prepared["bq"], prepared["wk"], prepared["bk"],
      prepared["wv"], prepared["bv"])
    return out[..., :value_size] if v_pad != value_size else out


def reference(q, k, v, params, attention_size):
    wq, bq, wk, bk, wv, bv = params
    query = q @ wq.T + bq
    key = k @ wk.T + bk
    value = v @ wv.T + bv
    g = (query @ key.T) / math.sqrt(attention_size)
    score = jax.nn.softmax(g, axis=-1)
    return score @ value


if __name__ == "__main__":
    # Small shapes consistent with the module's forward:
    #   q: (Nq, query_size), k: (Nk, key_size), v: (Nk, query_size)
    query_size = 32
    key_size = 32
    value_size = 32
    attention_size = 32
    Nq, Nk = 8, 8
    B = 4

    key0 = jax.random.PRNGKey(0)
    (kq, kk, kv, kwq, kbq, kwk, kbk, kwv, kbv,
     kqb, kkb, kvb) = jax.random.split(key0, 12)

    q = jax.random.normal(kq, (Nq, query_size), dtype=jnp.float32)
    k = jax.random.normal(kk, (Nk, key_size), dtype=jnp.float32)
    v = jax.random.normal(kv, (Nk, query_size), dtype=jnp.float32)

    # Deterministic parameter init (PyTorch Linear shapes: (out, in) + (out,))
    def linear_init(wkey, bkey, out_f, in_f):
        bound = 1.0 / math.sqrt(in_f)
        w = jax.random.uniform(wkey, (out_f, in_f), jnp.float32, -bound, bound)
        b = jax.random.uniform(bkey, (out_f,), jnp.float32, -bound, bound)
        return w, b

    wq, bq = linear_init(kwq, kbq, attention_size, query_size)
    wk, bk = linear_init(kwk, kbk, attention_size, key_size)
    wv, bv = linear_init(kwv, kbv, value_size, query_size)
    params = (wq, bq, wk, bk, wv, bv)

    # One-time prep, hoisted out of the hot path (per perf review).
    prepared = prepare_params(params, attention_size)

    # --- single-problem (2-D) path -------------------------------------
    out = jax.block_until_ready(single_head_attention(q, k, v, prepared))
    ref = reference(q, k, v, params, attention_size)
    assert out.shape == (Nq, value_size)
    # Tolerance accounts for bf16 matmul operands + EUP approx reciprocal.
    assert jnp.allclose(out, ref, atol=2e-2, rtol=2e-2), "2-D mismatch vs reference"

    # --- batched path (leading 'parallel' grid axis) --------------------
    q_b = jax.random.normal(kqb, (B, Nq, query_size), dtype=jnp.float32)
    k_b = jax.random.normal(kkb, (B, Nk, key_size), dtype=jnp.float32)
    v_b = jax.random.normal(kvb, (B, Nk, query_size), dtype=jnp.float32)

    out_b = jax.block_until_ready(
        single_head_attention_batched(q_b, k_b, v_b, prepared))
    ref_b = jax.vmap(
        lambda a, b_, c: reference(a, b_, c, params, attention_size)
    )(q_b, k_b, v_b)
    assert out_b.shape == (B, Nq, value_size)
    assert jnp.allclose(out_b, ref_b, atol=2e-2, rtol=2e-2), \
        "batched mismatch vs reference"

    print("KERNEL_OK")
</pallas_src>

<mosaic_0001>
module attributes {stable_mosaic.version = 11 : i64} {
  func.func @_attention_kernel(%arg0: memref<8x32xbf16, #tpu.memory_space<vmem>>, %arg1: memref<8x32xbf16, #tpu.memory_space<vmem>>, %arg2: memref<8x32xbf16, #tpu.memory_space<vmem>>, %arg3: memref<32x128xbf16, #tpu.memory_space<vmem>>, %arg4: memref<1x128xf32, #tpu.memory_space<vmem>>, %arg5: memref<32x128xbf16, #tpu.memory_space<vmem>>, %arg6: memref<1x128xf32, #tpu.memory_space<vmem>>, %arg7: memref<32x128xbf16, #tpu.memory_space<vmem>>, %arg8: memref<1x128xf32, #tpu.memory_space<vmem>>, %arg9: memref<8x128xf32, #tpu.memory_space<vmem>>) attributes {dimension_semantics = [], scalar_prefetch = 0 : i64, scratch_operands = 0 : i64, tpu.core_type = #tpu.core_type<tc>} {
    %c0 = arith.constant 0 : index
    %c0_0 = arith.constant 0 : index
    %0 = vector.load %arg0[%c0, %c0_0] : memref<8x32xbf16, #tpu.memory_space<vmem>>, vector<8x32xbf16>
    %c0_1 = arith.constant 0 : index
    %c0_2 = arith.constant 0 : index
    %1 = vector.load %arg3[%c0_1, %c0_2] : memref<32x128xbf16, #tpu.memory_space<vmem>>, vector<32x128xbf16>
    %cst = arith.constant dense<0.000000e+00> : vector<8x128xf32>
    %2 = tpu.matmul %0, %1, %cst {dimension_numbers = #tpu.dot_dimension_numbers<[1], [0], [0], [1], [0, 0, 1, 1], [], []>} : vector<8x32xbf16>, vector<32x128xbf16>, vector<8x128xf32> -> vector<8x128xf32>
    %c0_3 = arith.constant 0 : index
    %c0_4 = arith.constant 0 : index
    %3 = vector.load %arg4[%c0_3, %c0_4] : memref<1x128xf32, #tpu.memory_space<vmem>>, vector<1x128xf32>
    %4 = vector.broadcast %3 : vector<1x128xf32> to vector<8x128xf32>
    %5 = arith.addf %2, %4 : vector<8x128xf32>
    %6 = arith.truncf %5 : vector<8x128xf32> to vector<8x128xbf16>
    %c0_5 = arith.constant 0 : index
    %c0_6 = arith.constant 0 : index
    %7 = vector.load %arg1[%c0_5, %c0_6] : memref<8x32xbf16, #tpu.memory_space<vmem>>, vector<8x32xbf16>
    %c0_7 = arith.constant 0 : index
    %c0_8 = arith.constant 0 : index
    %8 = vector.load %arg5[%c0_7, %c0_8] : memref<32x128xbf16, #tpu.memory_space<vmem>>, vector<32x128xbf16>
    %cst_9 = arith.constant dense<0.000000e+00> : vector<8x128xf32>
    %9 = tpu.matmul %7, %8, %cst_9 {dimension_numbers = #tpu.dot_dimension_numbers<[1], [0], [0], [1], [0, 0, 1, 1], [], []>} : vector<8x32xbf16>, vector<32x128xbf16>, vector<8x128xf32> -> vector<8x128xf32>
    %c0_10 = arith.constant 0 : index
    %c0_11 = arith.constant 0 : index
    %10 = vector.load %arg6[%c0_10, %c0_11] : memref<1x128xf32, #tpu.memory_space<vmem>>, vector<1x128xf32>
    %11 = vector.broadcast %10 : vector<1x128xf32> to vector<8x128xf32>
    %12 = arith.addf %9, %11 : vector<8x128xf32>
    %13 = arith.truncf %12 : vector<8x128xf32> to vector<8x128xbf16>
    %c0_12 = arith.constant 0 : index
    %c0_13 = arith.constant 0 : index
    %14 = vector.load %arg2[%c0_12, %c0_13] : memref<8x32xbf16, #tpu.memory_space<vmem>>, vector<8x32xbf16>
    %c0_14 = arith.constant 0 : index
    %c0_15 = arith.constant 0 : index
    %15 = vector.load %arg7[%c0_14, %c0_15] : memref<32x128xbf16, #tpu.memory_space<vmem>>, vector<32x128xbf16>
    %cst_16 = arith.constant dense<0.000000e+00> : vector<8x128xf32>
    %16 = tpu.matmul %14, %15, %cst_16 {dimension_numbers = #tpu.dot_dimension_numbers<[1], [0], [0], [1], [0, 0, 1, 1], [], []>} : vector<8x32xbf16>, vector<32x128xbf16>, vector<8x128xf32> -> vector<8x128xf32>
    %c0_17 = arith.constant 0 : index
    %c0_18 = arith.constant 0 : index
    %17 = vector.load %arg8[%c0_17, %c0_18] : memref<1x128xf32, #tpu.memory_space<vmem>>, vector<1x128xf32>
    %18 = vector.broadcast %17 : vector<1x128xf32> to vector<8x128xf32>
    %19 = arith.addf %16, %18 : vector<8x128xf32>
    %20 = arith.truncf %19 : vector<8x128xf32> to vector<8x128xbf16>
    %cst_19 = arith.constant dense<0.000000e+00> : vector<8x8xf32>
    %21 = tpu.matmul %6, %13, %cst_19 {dimension_numbers = #tpu.dot_dimension_numbers<[1], [1], [0], [0], [0, 0, 1, 0], [], []>} : vector<8x128xbf16>, vector<8x128xbf16>, vector<8x8xf32> -> vector<8x8xf32>
    %cst_20 = arith.constant dense<0xFF800000> : vector<8xf32>
    %22 = vector.multi_reduction <maximumf>, %21, %cst_20 [1] : vector<8x8xf32> to vector<8xf32>
    %23 = vector.shape_cast %22 : vector<8xf32> to vector<8x1xf32>
    %24 = vector.broadcast %23 : vector<8x1xf32> to vector<8x8xf32>
    %25 = arith.subf %21, %24 : vector<8x8xf32>
    %26 = math.exp %25 : vector<8x8xf32>
    %cst_21 = arith.constant dense<0.000000e+00> : vector<8xf32>
    %27 = vector.multi_reduction <add>, %26, %cst_21 [1] : vector<8x8xf32> to vector<8xf32>
    %28 = vector.shape_cast %27 : vector<8xf32> to vector<8x1xf32>
    %29 = tpu.reciprocal %28 {approx = true} : vector<8x1xf32> -> vector<8x1xf32>
    %30 = vector.broadcast %29 : vector<8x1xf32> to vector<8x8xf32>
    %31 = arith.mulf %26, %30 : vector<8x8xf32>
    %32 = arith.truncf %31 : vector<8x8xf32> to vector<8x8xbf16>
    %cst_22 = arith.constant dense<0.000000e+00> : vector<8x128xf32>
    %33 = tpu.matmul %32, %20, %cst_22 {dimension_numbers = #tpu.dot_dimension_numbers<[1], [0], [0], [1], [0, 0, 1, 1], [], []>} : vector<8x8xbf16>, vector<8x128xbf16>, vector<8x128xf32> -> vector<8x128xf32>
    %c0_23 = arith.constant 0 : index
    %c0_24 = arith.constant 0 : index
    %34 = vector.load %arg9[%c0_23, %c0_24] : memref<8x128xf32, #tpu.memory_space<vmem>>, vector<8x128xf32>
    tpu.vector_store %arg9[%c0_23, %c0_24], %33 {strides = array<i32>} : memref<8x128xf32, #tpu.memory_space<vmem>>, vector<8x128xf32>,
    return
  }
}

</mosaic_0001>

<bundles_post_ra>
// kernel: tpu_custom_call.1
= control target key start
LH: loop header
LB: loop body
LE: loop exit
PB: predicated region body
PF: predicated region fallthrough
CT: control target
= control target key end

     0   :  { %14 = vsyncpa [#allocation3], 0  ;;  %s627_s0 = inlined_call_operand.hbm [shape: bf16[8,32], index: 0, kind: input, shape index: {}]   ;;  %s628_s1 = inlined_call_operand.hbm [shape: bf16[8,32], index: 1, kind: input, shape index: {}]   ;;  %s629_s2 = inlined_call_operand.hbm [shape: bf16[8,32], index: 2, kind: input, shape index: {}]   ;;  %s630_s3 = inlined_call_operand.hbm [shape: bf16[32,128], index: 3, kind: input, shape index: {}]   ;;  %s631_s4 = inlined_call_operand.vmem [shape: f32[1,128], index: 4, kind: input, shape index: {}]   ;;  %s632_s5 = inlined_call_operand.hbm [shape: bf16[32,128], index: 5, kind: input, shape index: {}]   ;;  %s633_s6 = inlined_call_operand.vmem [shape: f32[1,128], index: 6, kind: input, shape index: {}]   ;;  %s634_s7 = inlined_call_operand.hbm [shape: bf16[32,128], index: 7, kind: input, shape index: {}]   ;;  %s635_s8 = inlined_call_operand.vmem [shape: f32[1,128], index: 8, kind: input, shape index: {}]   ;;  %s636_s9 = inlined_call_operand.hbm [shape: f32[8,128], index: 9, kind: output, shape index: {}]  }
   0x1   :  { %15 = vsyncpa [#allocation6], 0 }
   0x2   :  { %16 = vsyncpa [#allocation9], 0 }
   0x3   :  { %17 = vsyncpa [#allocation12], 0  ;;  %s35_s11 = sshll.u32 %s628_s1, 4  ;;  %s36_s11 = int_to_ptr.hbm [resolvable:$true] %s35_s11 }
   0x4   :  { %18 = vsyncpa [#allocation4], 0  ;;  %s532_s12 = smov [#allocation5]   ;;  %s56_s16 = sshll.u32 %s630_s3, 4  ;;  %s57_s16 = int_to_ptr.hbm [resolvable:$true] %s56_s16 }
   0x5   :  { %s37_s13 = sshll.u32 %s532_s12, 4  ;;  %s533_s17 = smov [#allocation8]   ;;  %s38_s13 = int_to_ptr.vmem [resolvable:$true] %s37_s13 }
   0x6   :  { %40 = dma.hbm_to_vmem [thread:$0]  %s36_s11, 64, %s38_s13, [#allocation6]  }
   0x7   :  { %s58_s18 = sshll.u32 %s533_s17, 4  ;;  %s534_s19 = smov 64   ;;  %s59_s18 = int_to_ptr.vmem [resolvable:$true] %s58_s18 }
   0x8   :  { %s535_s20 = smov 4   ;;  %s24_s1 = sshll.u32 %s627_s0, 4  ;;  %s25_s1 = int_to_ptr.hbm [resolvable:$true] %s24_s1 }
   0x9   :  { %64 = dma.hbm_to_vmem [thread:$0]  %s57_s16, 256, %s59_s18, [#allocation9], %s534_s19, %s534_s19, %s535_s20  }
   0xa   :  { %s536_s23 = smov [#allocation2]   ;;  %s46_s3 = sshll.u32 %s629_s2, 4  ;;  %s47_s3 = int_to_ptr.hbm [resolvable:$true] %s46_s3 }
   0xb   :  { %s26_s24 = sshll.u32 %s536_s23, 4  ;;  %s537_s27 = smov [#allocation7]   ;;  %s27_s24 = int_to_ptr.vmem [resolvable:$true] %s26_s24 }
   0xc   :  { %29 = dma.hbm_to_vmem [thread:$0]  %s25_s1, 64, %s27_s24, [#allocation3]  }
   0xd   :  { %s48_s28 = sshll.u32 %s537_s27, 4  ;;  %s71_s10 = sshll.u32 %s632_s5, 4  ;;  %s49_s28 = int_to_ptr.vmem [resolvable:$true] %s48_s28  ;;  %s72_s10 = int_to_ptr.hbm [resolvable:$true] %s71_s10 }
   0xe   :  { %51 = dma.hbm_to_vmem [thread:$0]  %s47_s3, 64, %s49_s28, [#allocation6]  }
   0xf   :  { %s86_s12 = sshll.u32 %s634_s7, 4  ;;  %s538_s13 = smov [#allocation10]   ;;  %s87_s12 = int_to_ptr.hbm [resolvable:$true] %s86_s12 }
  0x10   :  { %s73_s14 = sshll.u32 %s538_s13, 4  ;;  %s539_s2 = smov [#allocation11]   ;;  %s74_s14 = int_to_ptr.vmem [resolvable:$true] %s73_s14 }
  0x11   :  { %79 = dma.hbm_to_vmem [thread:$0]  %s72_s10, 256, %s74_s14, [#allocation9], %s534_s19, %s534_s19, %s535_s20  }
  0x12   :  { %s88_s15 = sshll.u32 %s539_s2, 4  ;;  %s89_s15 = int_to_ptr.vmem [resolvable:$true] %s88_s15 }
  0x13   :  { %94 = dma.hbm_to_vmem [thread:$0]  %s87_s12, 256, %s89_s15, [#allocation12], %s534_s19, %s534_s19, %s535_s20  }
  0x14   :  { %522 = dma.done.wait [#allocation3], 64  }
  0x15   :  { %523 = vsyncadd [#allocation3], 4294967232 }
  0x16   :  { %524 = dma.done.wait [#allocation6], 128  }
  0x17   :  { %525 = vsyncadd [#allocation6], 4294967168 }
  0x18   :  { %526 = dma.done.wait [#allocation9], 512  }
  0x19   :  { %527 = vsyncadd [#allocation9], 4294966784 }
  0x1a   :  { %528 = dma.done.wait [#allocation12], 256  }
  0x1b   :  { %529 = vsyncadd [#allocation12], 4294967040  ;;  %v333_v0 = vld [vmem:[#allocation8 + $0x8] sm:$0xff]  ;;  %v335_v1 = vld [vmem:[#allocation10 + $0x8] sm:$0xff]  ;;  %vm143_vm0 = vcmask 261120   ;;  %vm250_vm1 = vcmask 64512  }
  0x1c   :  { %v332_v2 = vld [vmem:[#allocation8] sm:$0xff]  ;;  %153 = vmatpush.bf16.msra.mxu0 %v333_v0  ;;  %191 = vmatpush.bf16.msra.mxu1 %v335_v1  ;;  %v334_v3 = vld [vmem:[#allocation10] sm:$0xff]  ;;  %v161_v5 = vld [vmem:[#allocation5] sm:$0xf]  ;;  %vm266_vm2 = vcmask 1043456   ;;  %s291_s21 = sshll.u32 %s636_s9, 4  ;;  %s292_s21 = int_to_ptr.hbm [resolvable:$true] %s291_s21 }
  0x1d   :  { %v122_v4 = vld [vmem:[#allocation2] sm:$0xf]  ;;  %v337_v16 = vld [vmem:[#allocation11 + $0x8] sm:$0xff]  ;;  %v336_v17 = vld [vmem:[#allocation11] sm:$0xff] }
  0x1e   :  { %v348_v6 = vld [vmem:[%s633_s6] ss:$0 sm:$0xff]  ;;  %229 = vmatpush.bf16.msra.mxu2 %v337_v16  ;;  %v199_v18 = vld [vmem:[#allocation7] sm:$0xf] }
  0x1f   :  { %v347_v7 = vld [vmem:[%s631_s4] ss:$0 sm:$0xff] }
  0x20   :  { %154 = vmatpush.bf16.msra.mxu0 %v332_v2  ;;  %192 = vmatpush.bf16.msra.mxu1 %v334_v3  ;;  %v349_v22 = vld [vmem:[%s635_s8] ss:$0 sm:$0xff]  ;;  %s540_s8 = smov [#allocation13]  }
  0x21   :  { %s289_s18 = sshll.u32 %s540_s8, 4  ;;  %s290_s18 = int_to_ptr.vmem [resolvable:$true] %s289_s18 }
  0x22   :  { %230 = vmatpush.bf16.msra.mxu2 %v336_v17 }
  0x23   :  { %312 = vmatmul.msk.bf16.vlgmr.msra.gmra.mxu0 %vm143_vm0, %v122_v4  ;;  %321 = vmatmul.msk.bf16.vlgmr.msra.gmra.mxu1 %vm143_vm0, %v161_v5 }
  0x25   :  { %330 = vmatmul.msk.bf16.vlgmr.msra.gmra.mxu2 %vm143_vm0, %v199_v18 }
  0xa0   :  { %v156_v8 = vpop.f32.mrf.mxu0  ;;  %v194_v9 = vpop.f32.mrf.mxu1 }
  0xa1   :  { %v195_v10 = vadd.f32 %v348_v6, %v194_v9  ;;  %v157_v12 = vadd.f32 %v347_v7, %v156_v8 }
  0xa3   :  { %v198_v11 = vpack.c.bf16 %v195_v10, %v195_v10  ;;  %v160_v13 = vpack.c.bf16 %v157_v12, %v157_v12 }
  0xa5   :  { %244 = vmatpush.bf16.xpose.msra.mxu3 %v198_v11 }
  0xa8   :  { %v158_v14 = vpop.f32.mrf.mxu0  ;;  %v196_v15 = vpop.f32.mrf.mxu1 }
  0xa9   :  { %v232_v23 = vpop.f32.mrf.mxu2 }
  0xaa   :  { %v233_v25 = vadd.f32 %v349_v22, %v232_v23 }
  0xac   :  { %245 = vmatmul.bf16.vlgmr.msra.gmra.mxu3 %v160_v13  ;;  %v236_v27 = vpack.c.bf16 %v233_v25, %v233_v25 }
  0xae   :  { %v268_v29 = vsel %vm266_vm2, %v236_v27, 0 }
  0xaf   :  { %277 = vmatpush.bf16.msrb.mxu0 %v268_v29 }
  0xb1   :  { %v234_v30 = vpop.f32.mrf.mxu2 }
 0x12f   :  { %v246_v19 = vpop.f32.mrf.mxu3 }
 0x130   :  { %v251_v20 = vsel %vm250_vm1, %v246_v19, -inf }
 0x131   :  { %252 = vmax.xlane.f32.xlu0 %v251_v20 }
 0x137   :  { %v248_v21 = vpop.f32.mrf.mxu3 }
 0x1a4   :  { %v253_v24 = vpop.xlane.xlu0 %252 }
 0x1a5   :  { %v254_v26 = vsub.f32 %v246_v19, %v253_v24 }
 0x1a7   :  { %v255_v28 = vmul.f32 1.442695, %v254_v26 }
 0x1a9   :  { %350 = vpow2.f32 %v255_v28 }
 0x1af   :  { %v351_v31 = vpop.eup %350 }
 0x1b0   :  { %v257_v32 = vsel %vm250_vm1, %v351_v31, 0.0 }
 0x1b1   :  { %258 = vadd.xlane.f32.xlu0 %v257_v32 }
 0x224   :  { %v259_v33 = vpop.xlane.xlu0 %258 }
 0x225   :  { %352 = vrcp.f32 %v259_v33 }
 0x22b   :  { %v353_v34 = vpop.eup %352 }
 0x22c   :  { %v261_v35 = vmul.f32 %v353_v34, %v351_v31 }
 0x22e   :  { %v262_v36 = vpack.c.bf16 %v261_v35, %v261_v35 }
 0x230   :  { %331 = vmatmul.msk.bf16.vlgmr.msrb.gmra.mxu0 %vm250_vm1, %v262_v36 }
 0x2ad   :  { %v279_v37 = vpop.f32.mrf.mxu0 }
 0x2ae   :  { %283 = vst [vmem:[#allocation13] sm:$0xff] %v279_v37 }
 0x2af   :  { %294 = dma.vmem_to_hbm [thread:$0]  %s290_s18, 128, %s292_s21, [#allocation4]  }
 0x2b5   :  { %v281_v38 = vpop.f32.mrf.mxu0 }
 0x2b6   :  { %530 = dma.done.wait [#allocation4], 128  }
 0x2b7   :  { %531 = vsyncadd [#allocation4], 4294967168 }
 0x2b8   :  { %299 = vsyncpa [#allocation3], 1 }
 0x2b9   :  { %300 = vsyncpa [#allocation6], 1 }
 0x2ba   :  { %301 = vsyncpa [#allocation9], 1 }
 0x2bb   :  { %302 = vsyncpa [#allocation12], 1 }
 0x2bc   :  { %303 = vsyncpa [#allocation4], 1 }

</bundles_post_ra>
